<compile_context>
chip_gen: v6e
topology: v6e:2x2x1
jax: 0.10.0
libtpu: 0.0.40
codegen_flags: <defaults>
</compile_context>

<pallas_src>
import functools

import jax
import jax.numpy as jnp
from jax import lax
from jax.experimental import pallas as pl
from jax.experimental.pallas import tpu as pltpu

F_IN = 16
F_HID = 256
F_OUT = 2


def stacknn_kernel(x_ref, w1t_ref, b1_ref, w2t_ref, b2_ref, out_ref):
    # x arrives as f32 straight from HBM; cast to bf16 here (cheap, hidden under DMA).
    x_bf = x_ref[...].astype(jnp.bfloat16)                       # (TB, 16)

    # fc1 in the transposed orientation: (256,16) @ (TB,16)^T -> (256, TB).
    # Transposed-rhs contraction (same pattern as q @ k^T); f32 accumulation on the MXU.
    h = lax.dot_general(
        w1t_ref[...], x_bf,
        dimension_numbers=(((1,), (1,)), ((), ())),
        preferred_element_type=jnp.float32)                      # (256, TB) f32
    h = jnp.maximum(h + b1_ref[...], 0.0)                        # bias broadcasts along lanes

    # fc2: (2,256) @ (256,TB) -> (2, TB), bf16 operands, f32 accumulation.
    logits = jnp.dot(w2t_ref[...], h.astype(jnp.bfloat16),
                     preferred_element_type=jnp.float32)
    logits = logits + b2_ref[...]                                # (2, TB)

    # 2-class softmax == sigmoid of the logit difference:
    # row i of (2*logits - sum(logits)) is l_i - l_other, so p_i = 1/(1+exp(-(l_i-l_other))).
    # Elementwise + one tiny 2-row reduction; no lane-axis reductions, no approx reciprocal.
    d = 2.0 * logits - jnp.sum(logits, axis=0, keepdims=True)    # (2, TB)
    out_ref[...] = 1.0 / (1.0 + jnp.exp(-d))


def _choose_tile(batch, block_b):
    """Static (trace-time) batch-tile pick."""
    if batch <= 1024:
        return batch                      # single block: latency-dominated regime
    tb = -(-batch // 8)                   # ~8 grid steps => >=4 per TensorCore on v7x
    tb = min(tb, block_b)                 # cap so huge B amortizes step overhead w/o VMEM blowup
    return ((tb + 127) // 128) * 128      # keep the lane axis a multiple of 128


@functools.partial(jax.jit, static_argnames=("block_b",))
def stacknn_forward(x, w1t, b1c, w2t, b2c, *, block_b=8192):
    """x: (B, 16) f32; params already transposed/cast by prepare_params."""
    B = x.shape[0]
    tb = _choose_tile(B, block_b)

    out_t = pl.pallas_call(
        stacknn_kernel,
        out_shape=jax.ShapeDtypeStruct((F_OUT, B), jnp.float32),
        grid_spec=pltpu.PrefetchScalarGridSpec(
            num_scalar_prefetch=0,
            grid=(pl.cdiv(B, tb),),
            in_specs=[
                # x streamed per batch tile as f32 (no wrapper cast pass); the 16-wide
                # lane padding is VMEM/vreg-only, HBM bytes are read exactly once.
                pl.BlockSpec((tb, F_IN), lambda i: (i, 0)),
                pl.BlockSpec((F_HID, F_IN), lambda i: (0, 0)),   # w1^T : VMEM-resident
                pl.BlockSpec((F_HID, 1), lambda i: (0, 0)),      # b1   : VMEM-resident
                pl.BlockSpec((F_OUT, F_HID), lambda i: (0, 0)),  # w2^T : VMEM-resident
                pl.BlockSpec((F_OUT, 1), lambda i: (0, 0)),      # b2   : VMEM-resident
            ],
            # Lane-dense output: batch on the lane axis -> full unmasked stores.
            out_specs=pl.BlockSpec((F_OUT, tb), lambda i: (0, i)),
        ),
        compiler_params=pltpu.CompilerParams(
            # Independent batch tiles -> shard across both TCs on v7x; harmless on v5e/v6e.
            dimension_semantics=("parallel",),
            # Worst case (tb=8192): ~8 MiB x buffers + ~15 MiB intermediates; 48 MiB leaves
            # headroom and stays under v7x's 64 MiB physical VMEM.
            vmem_limit_bytes=48 << 20,
        ),
    )(x, w1t, b1c, w2t, b2c)

    return out_t.T   # (B, 2): cheap 8 B/row transpose back to the module's output layout


def init_params(key):
    # PyTorch nn.Linear-style init: U(-1/sqrt(fan_in), 1/sqrt(fan_in)), natural layout.
    k1, k2, k3, k4 = jax.random.split(key, 4)
    lim1 = 1.0 / jnp.sqrt(float(F_IN))
    lim2 = 1.0 / jnp.sqrt(float(F_HID))
    w1 = jax.random.uniform(k1, (F_IN, F_HID), jnp.float32, -lim1, lim1)
    b1 = jax.random.uniform(k2, (F_HID,), jnp.float32, -lim1, lim1)
    w2 = jax.random.uniform(k3, (F_HID, F_OUT), jnp.float32, -lim2, lim2)
    b2 = jax.random.uniform(k4, (F_OUT,), jnp.float32, -lim2, lim2)
    return w1, b1, w2, b2


def prepare_params(w1, b1, w2, b2):
    # One-time transpose + cast so the per-call path has zero param-massaging HLO.
    return (jnp.asarray(w1.T, jnp.bfloat16),
            jnp.asarray(b1, jnp.float32).reshape(F_HID, 1),
            jnp.asarray(w2.T, jnp.bfloat16),
            jnp.asarray(b2, jnp.float32).reshape(F_OUT, 1))


def reference(x, w1, b1, w2, b2):
    # Same precision recipe as the kernel (bf16 operands, f32 accumulation/softmax).
    h = jnp.dot(x.astype(jnp.bfloat16), w1.astype(jnp.bfloat16),
                preferred_element_type=jnp.float32) + b1
    h = jnp.maximum(h, 0.0)
    logits = jnp.dot(h.astype(jnp.bfloat16), w2.astype(jnp.bfloat16),
                     preferred_element_type=jnp.float32) + b2
    return jax.nn.softmax(logits, axis=-1)


if __name__ == "__main__":
    key = jax.random.PRNGKey(0)
    kx, kp, kx2 = jax.random.split(key, 3)
    w1, b1, w2, b2 = init_params(kp)
    params = jax.block_until_ready(prepare_params(w1, b1, w2, b2))

    # Small batch (shapes implied by the module: Linear(16,256) -> Linear(256,2)).
    B = 8
    x = jax.random.normal(kx, (B, F_IN), jnp.float32)
    out = jax.block_until_ready(stacknn_forward(x, *params))
    ref = reference(x, w1, b1, w2, b2)
    assert out.shape == (B, F_OUT)
    assert bool(jnp.all(jnp.isfinite(out)))
    assert jnp.allclose(out, ref, atol=2e-3, rtol=2e-3), "mismatch vs reference (B=8)"

    # Larger batch exercising the tiled lane-dense path (8 grid steps of TB=256).
    B2 = 2048
    x2 = jax.random.normal(kx2, (B2, F_IN), jnp.float32)
    out2 = jax.block_until_ready(stacknn_forward(x2, *params))
    ref2 = reference(x2, w1, b1, w2, b2)
    assert out2.shape == (B2, F_OUT)
    assert jnp.allclose(out2, ref2, atol=2e-3, rtol=2e-3), "mismatch vs reference (B=2048)"

    print("KERNEL_OK")
</pallas_src>

<mosaic_0001>
module attributes {stable_mosaic.version = 11 : i64} {
  func.func @stacknn_kernel(%arg0: i32, %arg1: memref<8x16xf32, #tpu.memory_space<vmem>>, %arg2: memref<256x16xbf16, #tpu.memory_space<vmem>>, %arg3: memref<256x1xf32, #tpu.memory_space<vmem>>, %arg4: memref<2x256xbf16, #tpu.memory_space<vmem>>, %arg5: memref<2x1xf32, #tpu.memory_space<vmem>>, %arg6: memref<2x8xf32, #tpu.memory_space<vmem>>) attributes {dimension_semantics = [#tpu.dimension_semantics<parallel>], iteration_bounds = array<i64: 1>, scalar_prefetch = 0 : i64, scratch_operands = 0 : i64, tpu.core_type = #tpu.core_type<tc>, window_params = [{transform_indices = @transform_0, window_bounds = array<i64: 8, 16>}, {pipeline_mode = #tpu.pipeline_mode<synchronous>, transform_indices = @transform_1, window_bounds = array<i64: 256, 16>}, {pipeline_mode = #tpu.pipeline_mode<synchronous>, transform_indices = @transform_2, window_bounds = array<i64: 256, 1>}, {pipeline_mode = #tpu.pipeline_mode<synchronous>, transform_indices = @transform_3, window_bounds = array<i64: 2, 256>}, {pipeline_mode = #tpu.pipeline_mode<synchronous>, transform_indices = @transform_4, window_bounds = array<i64: 2, 1>}, {transform_indices = @transform_5, window_bounds = array<i64: 2, 8>}]} {
    %c0 = arith.constant 0 : index
    %c0_0 = arith.constant 0 : index
    %0 = vector.load %arg1[%c0, %c0_0] : memref<8x16xf32, #tpu.memory_space<vmem>>, vector<8x16xf32>
    %1 = arith.truncf %0 : vector<8x16xf32> to vector<8x16xbf16>
    %c0_1 = arith.constant 0 : index
    %c0_2 = arith.constant 0 : index
    %2 = vector.load %arg2[%c0_1, %c0_2] : memref<256x16xbf16, #tpu.memory_space<vmem>>, vector<256x16xbf16>
    %cst = arith.constant dense<0.000000e+00> : vector<256x8xf32>
    %3 = tpu.matmul %2, %1, %cst {dimension_numbers = #tpu.dot_dimension_numbers<[1], [1], [0], [0], [0, 0, 1, 0], [], []>} : vector<256x16xbf16>, vector<8x16xbf16>, vector<256x8xf32> -> vector<256x8xf32>
    %c0_3 = arith.constant 0 : index
    %c0_4 = arith.constant 0 : index
    %4 = vector.load %arg3[%c0_3, %c0_4] : memref<256x1xf32, #tpu.memory_space<vmem>>, vector<256x1xf32>
    %5 = vector.broadcast %4 : vector<256x1xf32> to vector<256x8xf32>
    %6 = arith.addf %3, %5 : vector<256x8xf32>
    %cst_5 = arith.constant 0.000000e+00 : f32
    %7 = vector.broadcast %cst_5 : f32 to vector<256x8xf32>
    %8 = arith.maximumf %6, %7 : vector<256x8xf32>
    %c0_6 = arith.constant 0 : index
    %c0_7 = arith.constant 0 : index
    %9 = vector.load %arg4[%c0_6, %c0_7] : memref<2x256xbf16, #tpu.memory_space<vmem>>, vector<2x256xbf16>
    %10 = arith.truncf %8 : vector<256x8xf32> to vector<256x8xbf16>
    %cst_8 = arith.constant dense<0.000000e+00> : vector<2x8xf32>
    %11 = tpu.matmul %9, %10, %cst_8 {dimension_numbers = #tpu.dot_dimension_numbers<[1], [0], [0], [1], [0, 0, 1, 1], [], []>} : vector<2x256xbf16>, vector<256x8xbf16>, vector<2x8xf32> -> vector<2x8xf32>
    %c0_9 = arith.constant 0 : index
    %c0_10 = arith.constant 0 : index
    %12 = vector.load %arg5[%c0_9, %c0_10] : memref<2x1xf32, #tpu.memory_space<vmem>>, vector<2x1xf32>
    %13 = vector.broadcast %12 : vector<2x1xf32> to vector<2x8xf32>
    %14 = arith.addf %11, %13 : vector<2x8xf32>
    %cst_11 = arith.constant 2.000000e+00 : f32
    %15 = vector.broadcast %cst_11 : f32 to vector<2x8xf32>
    %16 = arith.mulf %15, %14 : vector<2x8xf32>
    %cst_12 = arith.constant dense<0.000000e+00> : vector<8xf32>
    %17 = vector.multi_reduction <add>, %14, %cst_12 [0] : vector<2x8xf32> to vector<8xf32>
    %18 = vector.shape_cast %17 : vector<8xf32> to vector<1x8xf32>
    %19 = vector.broadcast %18 : vector<1x8xf32> to vector<2x8xf32>
    %20 = arith.subf %16, %19 : vector<2x8xf32>
    %cst_13 = arith.constant 0.000000e+00 : f32
    %21 = vector.broadcast %cst_13 : f32 to vector<2x8xf32>
    %22 = arith.subf %21, %20 : vector<2x8xf32>
    %23 = math.exp %22 : vector<2x8xf32>
    %cst_14 = arith.constant 1.000000e+00 : f32
    %24 = vector.broadcast %cst_14 : f32 to vector<2x8xf32>
    %25 = arith.addf %24, %23 : vector<2x8xf32>
    %cst_15 = arith.constant 1.000000e+00 : f32
    %26 = vector.broadcast %cst_15 : f32 to vector<2x8xf32>
    %27 = arith.divf %26, %25 : vector<2x8xf32>
    %c0_16 = arith.constant 0 : index
    %c0_17 = arith.constant 0 : index
    %28 = vector.load %arg6[%c0_16, %c0_17] : memref<2x8xf32, #tpu.memory_space<vmem>>, vector<2x8xf32>
    tpu.vector_store %arg6[%c0_16, %c0_17], %27 {strides = array<i32>} : memref<2x8xf32, #tpu.memory_space<vmem>>, vector<2x8xf32>,
    return
  }
  func.func @transform_0(%arg0: i32) -> (i32, i32) {
    %c0_i32 = arith.constant 0 : i32
    %c0_i32_0 = arith.constant 0 : i32
    return %arg0, %c0_i32 : i32, i32
  }
  func.func @transform_1(%arg0: i32) -> (i32, i32) {
    %c0_i32 = arith.constant 0 : i32
    %c0_i32_0 = arith.constant 0 : i32
    %c0_i32_1 = arith.constant 0 : i32
    return %c0_i32, %c0_i32_0 : i32, i32
  }
  func.func @transform_2(%arg0: i32) -> (i32, i32) {
    %c0_i32 = arith.constant 0 : i32
    %c0_i32_0 = arith.constant 0 : i32
    %c0_i32_1 = arith.constant 0 : i32
    return %c0_i32, %c0_i32_0 : i32, i32
  }
  func.func @transform_3(%arg0: i32) -> (i32, i32) {
    %c0_i32 = arith.constant 0 : i32
    %c0_i32_0 = arith.constant 0 : i32
    %c0_i32_1 = arith.constant 0 : i32
    return %c0_i32, %c0_i32_0 : i32, i32
  }
  func.func @transform_4(%arg0: i32) -> (i32, i32) {
    %c0_i32 = arith.constant 0 : i32
    %c0_i32_0 = arith.constant 0 : i32
    %c0_i32_1 = arith.constant 0 : i32
    return %c0_i32, %c0_i32_0 : i32, i32
  }
  func.func @transform_5(%arg0: i32) -> (i32, i32) {
    %c0_i32 = arith.constant 0 : i32
    %c0_i32_0 = arith.constant 0 : i32
    return %c0_i32, %arg0 : i32, i32
  }
}

</mosaic_0001>

<bundles_post_ra>
// kernel: stacknn_forward.1
= control target key start
LH: loop header
LB: loop body
LE: loop exit
PB: predicated region body
PF: predicated region fallthrough
CT: control target
= control target key end

     0   :  { %vm328_vm0 = vcmask 130048   ;;  %v846_v3 = vmov 0   ;;  %s1163_s0 = inlined_call_operand.vmem [shape: f32[8,16], index: 0, kind: input, shape index: {}]   ;;  %s1164_s1 = inlined_call_operand.vmem [shape: bf16[256,16], index: 1, kind: input, shape index: {}]   ;;  %s1165_s2 = inlined_call_operand.vmem [shape: f32[256,1], index: 2, kind: input, shape index: {}]   ;;  %s1166_s3 = inlined_call_operand.vmem [shape: bf16[2,256], index: 3, kind: input, shape index: {}]   ;;  %s1167_s4 = inlined_call_operand.vmem [shape: f32[2,1], index: 4, kind: input, shape index: {}]   ;;  %s1168_s5 = inlined_call_operand.hbm [shape: f32[2,8], index: 5, kind: output, shape index: {}]  }
   0x1   :  { %v22_v0 = vld [vmem:[%s1163_s0] sm:$0xff]  ;;  %802 = vset.pattern.permute.xlu0 %v846_v3  ;;  %803 = vset.pattern.permute.xlu1 %v846_v3  ;;  %v86_v5 = vld [vmem:[%s1165_s2 + $0xf0] sm:$0xff]  ;;  %v87_v7 = vld [vmem:[%s1165_s2 + $0xf8] sm:$0xff] }
   0x2   :  { %v23_v1 = vpack.c.bf16 %v22_v0, %v22_v0  ;;  %v804_v2 = vld [vmem:[%s1164_s1] sm:$0xff]   ;;  %240 = vperm.xlu0 %802, %v86_v5   ;;  %v70_v6 = vld [vmem:[%s1165_s2 + $0x70] sm:$0xff]  ;;  %v805_v8 = vld [vmem:[%s1164_s1 + $0x8] sm:$0xff]  }
   0x3   :  { %766 = vmatprep.mubr.msk.bf16.mxu0 %vm328_vm0, %v804_v2  ;;  %160 = vperm.xlu1 %803, %v70_v6   ;;  %v71_v9 = vld [vmem:[%s1165_s2 + $0x78] sm:$0xff]  ;;  %v806_v10 = vld [vmem:[%s1164_s1 + $0x10] sm:$0xff]   ;;  %v84_v11 = vld [vmem:[%s1165_s2 + $0xe0] sm:$0xff] }
   0x4   :  { %798 = vmatprep.subr.msk.bf16.mxu0 %vm328_vm0, %v23_v1  ;;  %v378_v4 = vsel %vm328_vm0, %v23_v1, 0  ;;  %v85_v12 = vld [vmem:[%s1165_s2 + $0xe8] sm:$0xff]  ;;  %v807_v13 = vld [vmem:[%s1164_s1 + $0x18] sm:$0xff]   ;;  %v68_v14 = vld [vmem:[%s1165_s2 + $0x60] sm:$0xff] }
   0x5   :  { %765 = vmatpush3.bf16.xpose.msra.mxu0 %v378_v4  ;;  %v69_v15 = vld [vmem:[%s1165_s2 + $0x68] sm:$0xff]  ;;  %v808_v16 = vld [vmem:[%s1164_s1 + $0x20] sm:$0xff]   ;;  %v82_v17 = vld [vmem:[%s1165_s2 + $0xd0] sm:$0xff] }
   0x6   :  { %245 = vperm.xlu0 %802, %v87_v7   ;;  %v83_v18 = vld [vmem:[%s1165_s2 + $0xd8] sm:$0xff]  ;;  %v809_v19 = vld [vmem:[%s1164_s1 + $0x28] sm:$0xff]   ;;  %v66_v20 = vld [vmem:[%s1165_s2 + $0x50] sm:$0xff] }
   0x7   :  { %165 = vperm.xlu1 %803, %v71_v9   ;;  %v67_v21 = vld [vmem:[%s1165_s2 + $0x58] sm:$0xff]  ;;  %v810_v22 = vld [vmem:[%s1164_s1 + $0x30] sm:$0xff]   ;;  %v80_v23 = vld [vmem:[%s1165_s2 + $0xc0] sm:$0xff] }
   0x8   :  { %v81_v24 = vld [vmem:[%s1165_s2 + $0xc8] sm:$0xff] }
   0xa   :  { %230 = vperm.xlu0 %802, %v84_v11  }
   0xb   :  { %235 = vperm.xlu1 %803, %v85_v12  }
   0xc   :  { %767 = vmatmul.mubr.msk.bf16.vlgmr.msra.gmra.mxu0 %vm328_vm0, %v805_v8 }
   0xd   :  { %770 = vmatprep.mubr.msk.bf16.mxu0 %vm328_vm0, %v806_v10 }
   0xe   :  { %150 = vperm.xlu0 %802, %v68_v14  }
   0xf   :  { %155 = vperm.xlu1 %803, %v69_v15  }
  0x12   :  { %220 = vperm.xlu0 %802, %v82_v17  }
  0x13   :  { %225 = vperm.xlu1 %803, %v83_v18  }
  0x14   :  { %771 = vmatmul.mubr.msk.bf16.gmra.mxu0 %vm328_vm0, %v807_v13 }
  0x15   :  { %774 = vmatprep.mubr.msk.bf16.mxu0 %vm328_vm0, %v808_v16 }
  0x16   :  { %140 = vperm.xlu0 %802, %v66_v20  }
  0x17   :  { %145 = vperm.xlu1 %803, %v67_v21  }
  0x1c   :  { %775 = vmatmul.mubr.msk.bf16.gmra.mxu0 %vm328_vm0, %v809_v19 }
  0x1d   :  { %10 = vsyncpa [#allocation3], 0  ;;  %778 = vmatprep.mubr.msk.bf16.mxu0 %vm328_vm0, %v810_v22  ;;  %210 = vperm.xlu0 %802, %v80_v23   ;;  %v64_v25 = vld [vmem:[%s1165_s2 + $0x40] sm:$0xff]  ;;  %v811_v26 = vld [vmem:[%s1164_s1 + $0x38] sm:$0xff]   ;;  %v847_v7 = vmov 1966171168   ;;  %v608_v9 = vlaneseq }
  0x1e   :  { %215 = vperm.xlu1 %803, %v81_v24   ;;  %v65_v27 = vld [vmem:[%s1165_s2 + $0x48] sm:$0xff]  ;;  %v812_v28 = vld [vmem:[%s1164_s1 + $0x40] sm:$0xff]   ;;  %v78_v29 = vld [vmem:[%s1165_s2 + $0xb0] sm:$0xff]  ;;  %v606_v8 = vunpack.c.l.s4 %v847_v7  ;;  %vm662_vm1 = vcmask 58368  }
  0x1f   :  { %v79_v30 = vld [vmem:[%s1165_s2 + $0xb8] sm:$0xff]  ;;  %v62_v31 = vld [vmem:[%s1165_s2 + $0x30] sm:$0xff]  ;;  %v813_v32 = vld [vmem:[%s1164_s1 + $0x48] sm:$0xff]   ;;  %v609_v11 = vshrl.u32 %v608_v9, 7 }
  0x20   :  { %v63_v33 = vld [vmem:[%s1165_s2 + $0x38] sm:$0xff]  ;;  %v814_v34 = vld [vmem:[%s1164_s1 + $0x50] sm:$0xff]   ;;  %v76_v35 = vld [vmem:[%s1165_s2 + $0xa0] sm:$0xff]  ;;  %v607_v10 = vunpack.c.0.s8 %v606_v8 }
  0x21   :  { %130 = vperm.xlu0 %802, %v64_v25   ;;  %v77_v36 = vld [vmem:[%s1165_s2 + $0xa8] sm:$0xff]  ;;  %v60_v37 = vld [vmem:[%s1165_s2 + $0x20] sm:$0xff]  ;;  %v815_v38 = vld [vmem:[%s1164_s1 + $0x58] sm:$0xff]  }
  0x22   :  { %135 = vperm.xlu1 %803, %v65_v27   ;;  %v61_v39 = vld [vmem:[%s1165_s2 + $0x28] sm:$0xff]  ;;  %v816_v40 = vld [vmem:[%s1164_s1 + $0x60] sm:$0xff]   ;;  %v74_v41 = vld [vmem:[%s1165_s2 + $0x90] sm:$0xff]  ;;  %v1090_v15 = vsub.s32 %v607_v10, %v609_v11 }
  0x23   :  { %v75_v42 = vld [vmem:[%s1165_s2 + $0x98] sm:$0xff]  ;;  %v58_v43 = vld [vmem:[%s1165_s2 + $0x10] sm:$0xff]  ;;  %v817_v44 = vld [vmem:[%s1164_s1 + $0x68] sm:$0xff]  }
  0x24   :  { %779 = vmatmul.mubr.msk.bf16.gmra.mxu0 %vm328_vm0, %v811_v26  ;;  %v59_v45 = vld [vmem:[%s1165_s2 + $0x18] sm:$0xff]  ;;  %v818_v46 = vld [vmem:[%s1164_s1 + $0x70] sm:$0xff]   ;;  %v72_v47 = vld [vmem:[%s1165_s2 + $0x80] sm:$0xff] }
  0x25   :  { %782 = vmatprep.mubr.msk.bf16.mxu0 %vm328_vm0, %v812_v28  ;;  %200 = vperm.xlu0 %802, %v78_v29   ;;  %v73_v48 = vld [vmem:[%s1165_s2 + $0x88] sm:$0xff]  ;;  %v56_v49 = vld [vmem:[%s1165_s2] sm:$0xff]  ;;  %v819_v50 = vld [vmem:[%s1164_s1 + $0x78] sm:$0xff]  }
  0x26   :  { %205 = vperm.xlu1 %803, %v79_v30   ;;  %v57_v51 = vld [vmem:[%s1165_s2 + $0x8] sm:$0xff]  ;;  %v590_v52 = vld [vmem:[%s1167_s4] sm:$0x3] }
  0x27   :  { %v1086_v12 = vld.sshfl [vmem:[%s1166_s3] sm:$0x11 pattern:$0x75316420]  ;;  %s848_s3 = smov [#allocation2]  }
  0x28   :  { %v604_v14 = vcombine.high %v1086_v12, %v1086_v12  ;;  %s684_s4 = sshll.u32 %s848_s3, 4  ;;  %s685_s4 = int_to_ptr.vmem [resolvable:$true] %s684_s4 }
  0x29   :  { %120 = vperm.xlu0 %802, %v62_v31   ;;  %s824_s14 = scalar_lea.vmem %s685_s4, 32  ;;  %p829_p1 = scmp.lt.s32.totalorder %s685_s4, %s685_s4 }
  0x2a   :  { %125 = vperm.xlu1 %803, %v63_v33   ;;  %v618_v17 = vrot.slane %v604_v14, %v1090_v15  ;;  %p825_p0 = scmp.ne.s32.totalorder %s685_s4, %s824_s14  ;;  %p830_p2 = scmp.lt.s32.totalorder %s824_s14, %s824_s14 }
  0x2c   :  { %783 = vmatmul.mubr.msk.bf16.gmra.mxu0 %vm328_vm0, %v813_v32  ;;  %653 = vmatprep.mubr.bf16.mxu1 %v618_v17  ;;  %p831_p3 = por %p830_p2, %p829_p1 }
  0x2d   :  { %786 = vmatprep.mubr.msk.bf16.mxu0 %vm328_vm0, %v814_v34  ;;  %190 = vperm.xlu0 %802, %v76_v35  }
  0x2e   :  { %195 = vperm.xlu1 %803, %v77_v36   ;;  %p832_p4 = pnand %p831_p3, %p825_p0 }
  0x31   :  { %110 = vperm.xlu0 %802, %v60_v37  }
  0x32   :  { %115 = vperm.xlu1 %803, %v61_v39  }
  0x34   :  { %787 = vmatmul.mubr.msk.bf16.gmra.mxu0 %vm328_vm0, %v815_v38 }
  0x35   :  { %790 = vmatprep.mubr.msk.bf16.mxu0 %vm328_vm0, %v816_v40  ;;  %180 = vperm.xlu0 %802, %v74_v41  }
  0x36   :  { %185 = vperm.xlu1 %803, %v75_v42  }
  0x39   :  { %100 = vperm.xlu0 %802, %v58_v43  }
  0x3a   :  { %105 = vperm.xlu1 %803, %v59_v45  }
  0x3c   :  { %791 = vmatmul.mubr.msk.bf16.gmra.mxu0 %vm328_vm0, %v817_v44 }
  0x3d   :  { %794 = vmatprep.mubr.msk.bf16.mxu0 %vm328_vm0, %v818_v46  ;;  %170 = vperm.xlu0 %802, %v72_v47  }
  0x3e   :  { %175 = vperm.xlu1 %803, %v73_v48  }
  0x41   :  { %90 = vperm.xlu0 %802, %v56_v49  }
  0x42   :  { %95 = vperm.xlu1 %803, %v57_v51  }
  0x44   :  { %795 = vmatmul.mubr.msk.bf16.gmra.mxu0 %vm328_vm0, %v819_v50 }
  0x45   :  { %593 = vperm.xlu0 %802, %v590_v52  }
  0x7d   :  { %v1047_v53 = vpop.permute.xlu0 %240 }
  0x7e   :  { %v1049_v54 = vpop.permute.xlu1 %160 }
  0x81   :  { %v1051_v55 = vpop.permute.xlu0 %245 }
  0x82   :  { %v1053_v56 = vpop.permute.xlu1 %165 }
  0x85   :  { %v1055_v57 = vpop.permute.xlu0 %230 }
  0x86   :  { %v1057_v58 = vpop.permute.xlu1 %235 }
  0x89   :  { %v1059_v59 = vpop.permute.xlu0 %150 }
  0x8a   :  { %v1061_v60 = vpop.permute.xlu1 %155 }
  0x8d   :  { %v1063_v61 = vpop.permute.xlu0 %220 }
  0x8e   :  { %v1065_v62 = vpop.permute.xlu1 %225 }
  0x91   :  { %v1067_v63 = vpop.permute.xlu0 %140 }
  0x92   :  { %v1069_v0 = vpop.permute.xlu1 %145 }
  0x98   :  { %v1071_v1 = vpop.permute.xlu0 %210 }
  0x99   :  { %v1073_v2 = vpop.permute.xlu1 %215 }
  0x9c   :  { %v1075_v3 = vpop.permute.xlu0 %130 }
  0x9d   :  { %v1077_v4 = vpop.permute.xlu1 %135 }
  0xa0   :  { %v1079_v5 = vpop.permute.xlu0 %200 }
  0xa1   :  { %v1081_v6 = vpop.permute.xlu1 %205 }
  0xa4   :  { %v121_v13 = vpop.permute.xlu0 %120 }
  0xa5   :  { %v126_v16 = vpop.permute.xlu1 %125 }
  0xa8   :  { %v1095_v19 = vpop.permute.xlu0 %190 }
  0xa9   :  { %v1097_v20 = vpop.permute.xlu1 %195 }
  0xac   :  { %v111_v21 = vpop.permute.xlu0 %110 }
  0xad   :  { %v116_v22 = vpop.permute.xlu1 %115 }
  0xb0   :  { %v1099_v23 = vpop.permute.xlu0 %180 }
  0xb1   :  { %v1101_v24 = vpop.permute.xlu1 %185 }
  0xb4   :  { %v101_v25 = vpop.permute.xlu0 %100 }
  0xb5   :  { %v106_v26 = vpop.permute.xlu1 %105 }
  0xb8   :  { %v1103_v27 = vpop.permute.xlu0 %170 }
  0xb9   :  { %v1105_v28 = vpop.permute.xlu1 %175 }
  0xbc   :  { %v91_v30 = vpop.permute.xlu0 %90 }
  0xbd   :  { %v96_v34 = vpop.permute.xlu1 %95 }
  0xcc   :  { %v768_v29 = vpop.f32.mrf.mxu0 }
  0xcd   :  { %v423_v32 = vadd.f32 %v768_v29, %v101_v25 }
  0xce   :  { %v414_v31 = vpop.f32.mrf.mxu0 }
  0xcf   :  { %v415_v35 = vadd.f32 %v414_v31, %v91_v30  ;;  %v543_v38 = vmax.f32 %v423_v32, 0.0 }
  0xd0   :  { %v769_v33 = vpop.f32.mrf.mxu0 }
  0xd1   :  { %v426_v36 = vadd.f32 %v769_v33, %v106_v26  ;;  %v541_v42 = vmax.f32 %v415_v35, 0.0 }
  0xd2   :  { %v417_v37 = vpop.f32.mrf.mxu0 }
  0xd3   :  { %v544_v39 = vmax.f32 %v426_v36, 0.0  ;;  %v418_v40 = vadd.f32 %v417_v37, %v96_v34 }
  0xd4   :  { %v772_v41 = vpop.f32.mrf.mxu0 }
  0xd5   :  { %v1107_v43 = vpack.c.bf16 %v544_v39, %v543_v38  ;;  %v542_v44 = vmax.f32 %v418_v40, 0.0  ;;  %v439_v47 = vadd.f32 %v772_v41, %v121_v13 }
  0xd6   :  { %v430_v45 = vpop.f32.mrf.mxu0 }
  0xd7   :  { %v1109_v46 = vpack.c.bf16 %v542_v44, %v541_v42  ;;  %v431_v49 = vadd.f32 %v430_v45, %v111_v21  ;;  %v547_v52 = vmax.f32 %v439_v47, 0.0 }
  0xd8   :  { %v773_v48 = vpop.f32.mrf.mxu0 }
  0xd9   :  { %v442_v50 = vadd.f32 %v773_v48, %v126_v16  ;;  %v545_v10 = vmax.f32 %v431_v49, 0.0 }
  0xda   :  { %v433_v51 = vpop.f32.mrf.mxu0 }
  0xdb   :  { %v548_v7 = vmax.f32 %v442_v50, 0.0  ;;  %v434_v8 = vadd.f32 %v433_v51, %v116_v22 }
  0xdc   :  { %v776_v9 = vpop.f32.mrf.mxu0 }
  0xdd   :  { %v1111_v11 = vpack.c.bf16 %v548_v7, %v547_v52  ;;  %v546_v14 = vmax.f32 %v434_v8, 0.0 }
  0xde   :  { %v446_v17 = vpop.f32.mrf.mxu0 }
  0xdf   :  { %v1113_v25 = vpack.c.bf16 %v546_v14, %v545_v10 }
  0xe0   :  { %v777_v26 = vpop.f32.mrf.mxu0 }
  0xe2   :  { %v449_v29 = vpop.f32.mrf.mxu0 }
  0xe4   :  { %v780_v30 = vpop.f32.mrf.mxu0 }
  0xe5   :  { %v471_v48 = vadd.f32 %v780_v30, %v1049_v54 }
  0xe6   :  { %v462_v31 = vpop.f32.mrf.mxu0 }
  0xe8   :  { %v781_v13 = vpop.f32.mrf.mxu0 }
  0xe9   :  { %v474_v44 = vadd.f32 %v781_v13, %v1053_v56  ;;  %v555_v13 = vmax.f32 %v471_v48, 0.0 }
  0xea   :  { %v465_v32 = vpop.f32.mrf.mxu0 }
  0xeb   :  { %v556_v52 = vmax.f32 %v474_v44, 0.0  ;;  %v466_v7 = vadd.f32 %v465_v32, %v1061_v60 }
  0xec   :  { %v1115_v21 = vpop.f32.mrf.mxu0 }
  0xed   :  { %v554_v44 = vmax.f32 %v466_v7, 0.0 }
  0xee   :  { %v1117_v16 = vpop.f32.mrf.mxu0 }
  0xf0   :  { %v1119_v33 = vpop.f32.mrf.mxu0 }
  0xf2   :  { %v1121_v22 = vpop.f32.mrf.mxu0 }
  0xf4   :  { %v788_v34 = vpop.f32.mrf.mxu0 }
  0xf6   :  { %v494_v35 = vpop.f32.mrf.mxu0 }
  0xf8   :  { %v789_v36 = vpop.f32.mrf.mxu0 }
  0xfa   :  { %v497_v37 = vpop.f32.mrf.mxu0 }
  0xfc   :  { %v792_v38 = vpop.f32.mrf.mxu0 }
  0xfd   :  { %v519_v54 = vadd.f32 %v792_v38, %v1063_v61 }
  0xfe   :  { %v510_v39 = vpop.f32.mrf.mxu0 }
 0x100   :  { %v793_v40 = vpop.f32.mrf.mxu0 }
 0x101   :  { %v522_v10 = vadd.f32 %v793_v40, %v1065_v62  ;;  %v455_v40 = vadd.f32 %v776_v9, %v1067_v63  ;;  %v503_v63 = vadd.f32 %v788_v34, %v1079_v5  ;;  %v487_v34 = vadd.f32 %v1115_v21, %v1099_v23 }
 0x102   :  { %v513_v41 = vpop.f32.mrf.mxu0 }
 0x103   :  { %v568_v60 = vmax.f32 %v522_v10, 0.0  ;;  %v514_v32 = vadd.f32 %v513_v41, %v1073_v2  ;;  %v551_v48 = vmax.f32 %v455_v40, 0.0  ;;  %v447_v2 = vadd.f32 %v446_v17, %v1075_v3 }
 0x104   :  { %v796_v42 = vpop.f32.mrf.mxu0  ;;  %v490_v3 = vadd.f32 %v1119_v33, %v1101_v24 }
 0x105   :  { %v535_v47 = vadd.f32 %v796_v42, %v1047_v53  ;;  %v463_v53 = vadd.f32 %v462_v31, %v1059_v59  ;;  %v511_v59 = vadd.f32 %v510_v39, %v1071_v1  ;;  %v566_v38 = vmax.f32 %v514_v32, 0.0 }
 0x106   :  { %v526_v45 = vpop.f32.mrf.mxu0  ;;  %v498_v39 = vadd.f32 %v497_v37, %v1097_v20  ;;  %v560_v20 = vmax.f32 %v490_v3, 0.0  ;;  %v482_v37 = vadd.f32 %v1121_v22, %v1105_v28  ;;  %v1169_v28 = vrot.slane %v1086_v12, %v1090_v15 }
 0x107   :  { %v527_v50 = vadd.f32 %v526_v45, %v1055_v57  ;;  %v571_v14 = vmax.f32 %v535_v47, 0.0  ;;  %v581_v45 = vpack.c.bf16 %v556_v52, %v555_v13  ;;  %v567_v47 = vmax.f32 %v519_v54, 0.0 }
 0x108   :  { %v797_v49 = vpop.f32.mrf.mxu0  ;;  %v565_v9 = vmax.f32 %v511_v59, 0.0  ;;  %v562_v5 = vmax.f32 %v498_v39, 0.0  ;;  %v558_v33 = vmax.f32 %v482_v37, 0.0 }
 0x109   :  { %v538_v51 = vadd.f32 %v797_v49, %v1051_v55  ;;  %v569_v30 = vmax.f32 %v527_v50, 0.0  ;;  %v458_v55 = vadd.f32 %v777_v26, %v1069_v0  ;;  %v506_v0 = vadd.f32 %v789_v36, %v1081_v6 }
 0x10a   :  { %v529_v8 = vpop.f32.mrf.mxu0  ;;  %v587_v26 = vpack.c.bf16 %v568_v60, %v567_v47  ;;  %v586_v50 = vpack.c.bf16 %v566_v38, %v565_v9  ;;  %v495_v6 = vadd.f32 %v494_v35, %v1095_v19  ;;  %v559_v19 = vmax.f32 %v487_v34, 0.0 }
 0x10b   :  { %v572_v18 = vmax.f32 %v538_v51, 0.0  ;;  %v530_v56 = vadd.f32 %v529_v8, %v1057_v58  ;;  %v553_v58 = vmax.f32 %v463_v53, 0.0  ;;  %v552_v61 = vmax.f32 %v458_v55, 0.0 }
 0x10c   :  { %v564_v1 = vmax.f32 %v506_v0, 0.0  ;;  %v561_v51 = vmax.f32 %v495_v6, 0.0  ;;  %v479_v35 = vadd.f32 %v1117_v16, %v1103_v27  ;;  %v583_v24 = vpack.c.bf16 %v560_v20, %v559_v19  ;;  %v594_v16 = vpop.permute.xlu0 %593 }
 0x10d   :  { %v570_v42 = vmax.f32 %v530_v56, 0.0  ;;  %v589_v57 = vpack.c.bf16 %v572_v18, %v571_v14  ;;  %v450_v18 = vadd.f32 %v449_v29, %v1077_v4  ;;  %v580_v31 = vpack.c.bf16 %v554_v44, %v553_v58 }
 0x10e   :  { %v579_v41 = vpack.c.bf16 %v552_v61, %v551_v48  ;;  %v549_v4 = vmax.f32 %v447_v2, 0.0  ;;  %v563_v29 = vmax.f32 %v503_v63, 0.0  ;;  %v584_v52 = vpack.c.bf16 %v562_v5, %v561_v51 }
 0x10f   :  { %v588_v62 = vpack.c.bf16 %v570_v42, %v569_v30  ;;  %742 = vmatprep.subr.bf16.mxu1 %v589_v57  ;;  %v550_v49 = vmax.f32 %v450_v18, 0.0  ;;  %v557_v7 = vmax.f32 %v479_v35, 0.0 }
 0x110   :  { %743 = vmatpush3.bf16.msra.mxu1 %v581_v45  ;;  %v585_v17 = vpack.c.bf16 %v564_v1, %v563_v29 }
 0x111   :  { %744 = vmatprep.subr.bf16.mxu1 %v588_v62  ;;  %v578_v36 = vpack.c.bf16 %v550_v49, %v549_v4  ;;  %v582_v23 = vpack.c.bf16 %v558_v33, %v557_v7 }
 0x114   :  { %745 = vmatpush3.bf16.msra.mxu1 %v580_v31 }
 0x115   :  { %746 = vmatprep.subr.bf16.mxu1 %v587_v26 }
 0x118   :  { %747 = vmatpush3.bf16.msra.mxu1 %v579_v41 }
 0x119   :  { %748 = vmatprep.subr.bf16.mxu1 %v586_v50 }
 0x11c   :  { %749 = vmatpush3.bf16.msra.mxu1 %v578_v36 }
 0x11d   :  { %750 = vmatprep.subr.bf16.mxu1 %v585_v17 }
 0x120   :  { %751 = vmatpush3.bf16.msra.mxu1 %v1111_v11 }
 0x121   :  { %752 = vmatprep.subr.bf16.mxu1 %v584_v52 }
 0x124   :  { %753 = vmatpush3.bf16.msra.mxu1 %v1113_v25 }
 0x125   :  { %754 = vmatprep.subr.bf16.mxu1 %v583_v24 }
 0x128   :  { %755 = vmatpush3.bf16.msra.mxu1 %v1107_v43 }
 0x129   :  { %756 = vmatprep.subr.bf16.mxu1 %v582_v23 }
 0x12c   :  { %757 = vmatpush3.bf16.msra.mxu1 %v1109_v46 }
 0x12f   :  { %654 = vmatmul.mubr.bf16.vlgmr.msra.gmra.mxu1 %v1169_v28 }
 0x1ef   :  { %v758_v11 = vpop.f32.mrf.mxu1 }
 0x1f1   :  { %v759_v21 = vpop.f32.mrf.mxu1 }
 0x1f2   :  { %v760_v27 = vadd.f32 %v759_v21, %v758_v11 }
 0x1f3   :  { %v761_v22 = vpop.f32.mrf.mxu1 }
 0x1f4   :  { %v656_v8 = vadd.f32 %v760_v27, %v594_v16 }
 0x1f5   :  { %v762_v25 = vpop.f32.mrf.mxu1 }
 0x1f6   :  { %v663_v10 = vsel %vm662_vm1, %v656_v8, 0.0  ;;  %v661_v46 = vmul.f32 2.0, %v656_v8 }
 0x1f7   :  { %v664_v14 = vrot.slane %v663_v10, 4 }
 0x1f9   :  { %v665_v56 = vadd.f32 %v664_v14, %v663_v10 }
 0x1fb   :  { %v666_v43 = vrot.slane %v665_v56, 2 }
 0x1fd   :  { %v667_v13 = vadd.f32 %v666_v43, %v665_v56 }
 0x1ff   :  { %v668_v53 = vrot.slane %v667_v13, 1 }
 0x201   :  { %v669_v54 = vadd.f32 %v668_v53, %v667_v13 }
 0x203   :  { %v670_v30 = vsub.f32 %v661_v46, %v669_v54 }
 0x205   :  { %v671_v12 = vsub.f32 0.0, %v670_v30 }
 0x207   :  { %v672_v15 = vmul.f32 1.442695, %v671_v12 }
 0x209   :  { %820 = vpow2.f32 %v672_v15 }
 0x216   :  { %v821_v42 = vpop.eup %820 }
 0x217   :  { %v674_v57 = vadd.f32 1.0, %v821_v42 }
 0x219   :  { %822 = vrcp.f32 %v674_v57 }
 0x226   :  { %v823_v55 = vpop.eup %822 }
 0x227   :  { %677 = vst.msk [vmem:[#allocation2] sm:$0x3] %vm662_vm1, %v823_v55 }
 0x228   :  { %835 = shalt.err (!%p832_p4)
}
 0x229   :  { %687 = dma.vmem_to_hbm [thread:$0]  %s685_s4, 32, %s1168_s5, [#allocation3]  }
 0x22a   :  { %844 = dma.done.wait [#allocation3], 32  }
 0x22b   :  { %845 = vsyncadd [#allocation3], 4294967264 }
 0x22c   :  { %691 = vsyncpa [#allocation3], 1 }

</bundles_post_ra>
